<compile_context>
chip_gen: v5e
topology: v5e:2x2
jax: 0.10.0
libtpu: 0.0.40
codegen_flags: <defaults>
</compile_context>

<pallas_src>
import jax
import jax.numpy as jnp
from jax.experimental import pallas as pl
from jax.experimental.pallas import tpu as pltpu

B, S, N, E, H = 2, 8, 3, 64, 128  # batch, seq, node_size, embededLLM_dim, hidden_state_dim


def _round_up(x, m):
    return (x + m - 1) // m * m


def router_kernel(scal_ref, x_ref, y_ref, w1_ref, b1_ref, w2_ref, logits_ref):
    b2 = scal_ref[0]        # SMEM scalar: similarity_mlp[2].bias
    inv_t = scal_ref[1]     # SMEM scalar: 1 / temperature

    x = x_ref[...]          # (bb, H)  hidden_state tile (CLS token rows)
    y = y_ref[...]          # (N, H)   precomputed projected embeddings
    bb, h = x.shape
    n = y.shape[0]

    # n-major broadcast product: each (bb, H) slab is (8,128)-tile aligned,
    # so collapsing to one (N*bb, H) MXU operand is layout-free and the VPU
    # multiply stays dense (bb full sublane groups per vreg, not 3/8).
    z = (y[:, None, :] * x[None, :, :]).reshape(n * bb, h)

    # similarity_mlp[0] (Linear H->H) + ReLU: one MXU matmul stream with an
    # f32 accumulator (operands may be bf16 on v6e/v7x).
    hid = jnp.dot(z, w1_ref[...], preferred_element_type=jnp.float32) + b1_ref[...]
    hid = jnp.maximum(hid, 0.0)                                     # (N*bb, H) f32

    # similarity_mlp[2] (Linear H->1) as a VPU multiply + lane reduction on
    # otherwise-idle slots (frees the MXU).  Bias and 1/t fold into the store
    # epilogue; the (N, bb) store is lane-dense (batch tile on the lane axis).
    o = jnp.sum(hid.reshape(n, bb, h) * w2_ref[...], axis=-1)       # (N, bb)
    logits_ref[...] = (o + b2) * inv_t


def prepare_router_weights(params, compute_dtype=jnp.float32):
    """One-time (weight-load) precompute.  y depends only on parameters, so it
    never belongs in the per-call kernel path.  compute_dtype=jnp.bfloat16 is
    recommended on v6e/v7x (halves the x/W1 DMA streams, 2x MXU throughput);
    keep f32 on v5e."""
    y = params["embeddings"] @ params["wp"].T + params["bp"]            # (N, H)
    return {
        "y": y.astype(compute_dtype),                                   # (N, H)
        "w1_t": params["w1"].T.astype(compute_dtype),                   # (H, H)
        "b1": params["b1"].reshape(1, -1).astype(jnp.float32),          # (1, H)
        "w2_row": params["w2"].reshape(1, -1).astype(jnp.float32),      # (1, H)
        "b2": params["b2"].reshape(()).astype(jnp.float32),             # scalar
    }


def router_forward(last_hidden_state, prepared, t=1.0):
    """Returns (logits, hidden_state) exactly like RouterModule.forward."""
    hidden_state = last_hidden_state[:, 0, :]                  # (B, H) -- glue
    x = hidden_state.astype(prepared["w1_t"].dtype)
    b, h = x.shape
    n = prepared["y"].shape[0]

    # --- batch tiling --------------------------------------------------------
    # Pad the batch to a multiple of 8 (sublane group) and pick the biggest
    # tile that keeps per-step overhead amortized (cap 512 rows).  Batches of
    # 256/512 rows split into two "parallel" steps so v7x's two TensorCores
    # both get work; tiny batches collapse to one step (launch-bound anyway).
    TILE_CAP = 512
    b_pad = _round_up(b, 8)
    if b_pad > TILE_CAP:
        bb = TILE_CAP
        b_pad = _round_up(b_pad, bb)
    elif b_pad % 256 == 0:
        bb = b_pad // 2          # 2 grid steps, 128-lane-aligned output blocks
    else:
        bb = b_pad               # single step; block dims equal full dims
    grid = (b_pad // bb,)

    if b_pad != b:
        x = jnp.pad(x, ((0, b_pad - b), (0, 0)))   # padded rows are sliced off below

    # Runtime scalars in SMEM: [b2, 1/t].  No recompile per temperature.
    inv_t = jnp.float32(1.0) / jnp.asarray(t, jnp.float32)
    scal = jnp.stack([prepared["b2"], inv_t]).astype(jnp.float32)   # (2,)

    out = pl.pallas_call(
        router_kernel,
        out_shape=jax.ShapeDtypeStruct((n, b_pad), jnp.float32),
        grid=grid,
        in_specs=[
            pl.BlockSpec(memory_space=pltpu.MemorySpace.SMEM),   # [b2, 1/t]
            pl.BlockSpec((bb, h), lambda i: (i, 0)),             # x tile
            pl.BlockSpec((n, h), lambda i: (0, 0)),              # y (proj. emb)
            pl.BlockSpec((h, h), lambda i: (0, 0)),              # W1^T
            pl.BlockSpec((1, h), lambda i: (0, 0)),              # b1
            pl.BlockSpec((1, h), lambda i: (0, 0)),              # w2 row
        ],
        out_specs=pl.BlockSpec((n, bb), lambda i: (0, i)),       # lane-dense store
        compiler_params=pltpu.CompilerParams(
            dimension_semantics=("parallel",)),
    )(scal, x, prepared["y"], prepared["w1_t"], prepared["b1"], prepared["w2_row"])

    logits = out[:, :b].T                                        # (B, N)
    return logits, hidden_state


def router_forward_ref(last_hidden_state, params, t=1.0):
    """Pure-JAX reference mirroring the PyTorch module, for verification."""
    x = last_hidden_state[:, 0, :]
    y = params["embeddings"] @ params["wp"].T + params["bp"]
    z = x[:, None, :] * y[None, :, :]
    hid = jnp.maximum(jnp.einsum("bnh,kh->bnk", z, params["w1"]) + params["b1"], 0.0)
    out = jnp.einsum("bnh,kh->bnk", hid, params["w2"]) + params["b2"]
    logits = out[..., 0] / t
    return logits, x


def init_params(key):
    ks = jax.random.split(key, 7)
    return {
        # nn.Embedding(node_size, embededLLM_dim) -- normally loaded from EmbedLLM .npy
        "embeddings": jax.random.normal(ks[0], (N, E), jnp.float32),
        # nn.Linear(embededLLM_dim, hidden_state_dim): weight (H, E), bias (H,)
        "wp": jax.random.normal(ks[1], (H, E), jnp.float32) * 0.05,
        "bp": jax.random.normal(ks[2], (H,), jnp.float32) * 0.05,
        # similarity_mlp[0] = nn.Linear(H, H)
        "w1": jax.random.normal(ks[3], (H, H), jnp.float32) * 0.05,
        "b1": jax.random.normal(ks[4], (H,), jnp.float32) * 0.05,
        # similarity_mlp[2] = nn.Linear(H, 1): weight (1, H), bias (1,)
        "w2": jax.random.normal(ks[5], (1, H), jnp.float32) * 0.05,
        "b2": jax.random.normal(ks[6], (1,), jnp.float32) * 0.05,
    }


if __name__ == "__main__":
    key = jax.random.PRNGKey(0)
    k_in, k_par = jax.random.split(key)
    last_hidden_state = jax.random.normal(k_in, (B, S, H), jnp.float32)
    params = init_params(k_par)
    temperature = 2.0

    ref_logits, ref_hidden = router_forward_ref(last_hidden_state, params, t=temperature)

    # f32 path (default; tight tolerance, safe on all generations).
    prepared = prepare_router_weights(params)                 # weight-load-time precompute
    logits, hidden_state = router_forward(last_hidden_state, prepared, t=temperature)
    jax.block_until_ready((logits, hidden_state))
    assert logits.shape == (B, N) and hidden_state.shape == (B, H)
    assert jnp.allclose(logits, ref_logits, atol=1e-4, rtol=1e-4)
    assert jnp.allclose(hidden_state, ref_hidden)

    # bf16-operand path (v6e/v7x recommendation): f32 accumulation, loose tol.
    prepared_bf16 = prepare_router_weights(params, compute_dtype=jnp.bfloat16)
    logits_bf16, _ = router_forward(last_hidden_state, prepared_bf16, t=temperature)
    jax.block_until_ready(logits_bf16)
    assert jnp.allclose(logits_bf16, ref_logits, atol=5e-2, rtol=5e-2)

    print("KERNEL_OK")
</pallas_src>

<mosaic_0001>
module attributes {stable_mosaic.version = 11 : i64} {
  func.func @router_kernel(%arg0: i32, %arg1: memref<2xf32, #tpu.memory_space<smem>>, %arg2: memref<8x128xf32, #tpu.memory_space<vmem>>, %arg3: memref<3x128xf32, #tpu.memory_space<vmem>>, %arg4: memref<128x128xf32, #tpu.memory_space<vmem>>, %arg5: memref<1x128xf32, #tpu.memory_space<vmem>>, %arg6: memref<1x128xf32, #tpu.memory_space<vmem>>, %arg7: memref<3x8xf32, #tpu.memory_space<vmem>>) attributes {dimension_semantics = [#tpu.dimension_semantics<parallel>], iteration_bounds = array<i64: 1>, scalar_prefetch = 0 : i64, scratch_operands = 0 : i64, tpu.core_type = #tpu.core_type<tc>, window_params = [{transform_indices = @transform_0, window_bounds = array<i64: 2>}, {transform_indices = @transform_1, window_bounds = array<i64: 8, 128>}, {pipeline_mode = #tpu.pipeline_mode<synchronous>, transform_indices = @transform_2, window_bounds = array<i64: 3, 128>}, {pipeline_mode = #tpu.pipeline_mode<synchronous>, transform_indices = @transform_3, window_bounds = array<i64: 128, 128>}, {pipeline_mode = #tpu.pipeline_mode<synchronous>, transform_indices = @transform_4, window_bounds = array<i64: 1, 128>}, {pipeline_mode = #tpu.pipeline_mode<synchronous>, transform_indices = @transform_5, window_bounds = array<i64: 1, 128>}, {transform_indices = @transform_6, window_bounds = array<i64: 3, 8>}]} {
    %c0 = arith.constant 0 : index
    %0 = memref.load %arg1[%c0] : memref<2xf32, #tpu.memory_space<smem>>
    %c1 = arith.constant 1 : index
    %1 = memref.load %arg1[%c1] : memref<2xf32, #tpu.memory_space<smem>>
    %c0_0 = arith.constant 0 : index
    %c0_1 = arith.constant 0 : index
    %2 = vector.load %arg2[%c0_0, %c0_1] : memref<8x128xf32, #tpu.memory_space<vmem>>, vector<8x128xf32>
    %c0_2 = arith.constant 0 : index
    %c0_3 = arith.constant 0 : index
    %3 = vector.load %arg3[%c0_2, %c0_3] : memref<3x128xf32, #tpu.memory_space<vmem>>, vector<3x128xf32>
    %4 = vector.shape_cast %3 : vector<3x128xf32> to vector<3x1x128xf32>
    %5 = vector.shape_cast %2 : vector<8x128xf32> to vector<1x8x128xf32>
    %6 = vector.broadcast %4 : vector<3x1x128xf32> to vector<3x8x128xf32>
    %7 = vector.broadcast %5 : vector<1x8x128xf32> to vector<3x8x128xf32>
    %8 = arith.mulf %6, %7 : vector<3x8x128xf32>
    %9 = vector.shape_cast %8 : vector<3x8x128xf32> to vector<24x128xf32>
    %c0_4 = arith.constant 0 : index
    %c0_5 = arith.constant 0 : index
    %10 = vector.load %arg4[%c0_4, %c0_5] : memref<128x128xf32, #tpu.memory_space<vmem>>, vector<128x128xf32>
    %cst = arith.constant dense<0.000000e+00> : vector<24x128xf32>
    %11 = tpu.matmul %9, %10, %cst {dimension_numbers = #tpu.dot_dimension_numbers<[1], [0], [0], [1], [0, 0, 1, 1], [], []>} : vector<24x128xf32>, vector<128x128xf32>, vector<24x128xf32> -> vector<24x128xf32>
    %c0_6 = arith.constant 0 : index
    %c0_7 = arith.constant 0 : index
    %12 = vector.load %arg5[%c0_6, %c0_7] : memref<1x128xf32, #tpu.memory_space<vmem>>, vector<1x128xf32>
    %13 = vector.broadcast %12 : vector<1x128xf32> to vector<24x128xf32>
    %14 = arith.addf %11, %13 : vector<24x128xf32>
    %cst_8 = arith.constant 0.000000e+00 : f32
    %15 = vector.broadcast %cst_8 : f32 to vector<24x128xf32>
    %16 = arith.maximumf %14, %15 : vector<24x128xf32>
    %17 = vector.shape_cast %16 : vector<24x128xf32> to vector<3x8x128xf32>
    %c0_9 = arith.constant 0 : index
    %c0_10 = arith.constant 0 : index
    %18 = vector.load %arg6[%c0_9, %c0_10] : memref<1x128xf32, #tpu.memory_space<vmem>>, vector<1x128xf32>
    %19 = vector.shape_cast %18 : vector<1x128xf32> to vector<1x1x128xf32>
    %20 = vector.broadcast %19 : vector<1x1x128xf32> to vector<3x8x128xf32>
    %21 = arith.mulf %17, %20 : vector<3x8x128xf32>
    %cst_11 = arith.constant dense<0.000000e+00> : vector<3x8xf32>
    %22 = vector.multi_reduction <add>, %21, %cst_11 [2] : vector<3x8x128xf32> to vector<3x8xf32>
    %23 = vector.broadcast %0 : f32 to vector<3x8xf32>
    %24 = arith.addf %22, %23 : vector<3x8xf32>
    %25 = vector.broadcast %1 : f32 to vector<3x8xf32>
    %26 = arith.mulf %24, %25 : vector<3x8xf32>
    %c0_12 = arith.constant 0 : index
    %c0_13 = arith.constant 0 : index
    %27 = vector.load %arg7[%c0_12, %c0_13] : memref<3x8xf32, #tpu.memory_space<vmem>>, vector<3x8xf32>
    tpu.vector_store %arg7[%c0_12, %c0_13], %26 {strides = array<i32>} : memref<3x8xf32, #tpu.memory_space<vmem>>, vector<3x8xf32>,
    return
  }
  func.func @transform_0(%arg0: i32) -> i32 {
    %c0_i32 = arith.constant 0 : i32
    %c0_i32_0 = arith.constant 0 : i32
    return %c0_i32 : i32
  }
  func.func @transform_1(%arg0: i32) -> (i32, i32) {
    %c0_i32 = arith.constant 0 : i32
    %c0_i32_0 = arith.constant 0 : i32
    return %arg0, %c0_i32 : i32, i32
  }
  func.func @transform_2(%arg0: i32) -> (i32, i32) {
    %c0_i32 = arith.constant 0 : i32
    %c0_i32_0 = arith.constant 0 : i32
    %c0_i32_1 = arith.constant 0 : i32
    return %c0_i32, %c0_i32_0 : i32, i32
  }
  func.func @transform_3(%arg0: i32) -> (i32, i32) {
    %c0_i32 = arith.constant 0 : i32
    %c0_i32_0 = arith.constant 0 : i32
    %c0_i32_1 = arith.constant 0 : i32
    return %c0_i32, %c0_i32_0 : i32, i32
  }
  func.func @transform_4(%arg0: i32) -> (i32, i32) {
    %c0_i32 = arith.constant 0 : i32
    %c0_i32_0 = arith.constant 0 : i32
    %c0_i32_1 = arith.constant 0 : i32
    return %c0_i32, %c0_i32_0 : i32, i32
  }
  func.func @transform_5(%arg0: i32) -> (i32, i32) {
    %c0_i32 = arith.constant 0 : i32
    %c0_i32_0 = arith.constant 0 : i32
    %c0_i32_1 = arith.constant 0 : i32
    return %c0_i32, %c0_i32_0 : i32, i32
  }
  func.func @transform_6(%arg0: i32) -> (i32, i32) {
    %c0_i32 = arith.constant 0 : i32
    %c0_i32_0 = arith.constant 0 : i32
    return %c0_i32, %arg0 : i32, i32
  }
}

</mosaic_0001>

<bundles_post_ra>
// kernel: tpu_custom_call.1
= control target key start
LH: loop header
LB: loop body
LE: loop exit
PB: predicated region body
PF: predicated region fallthrough
CT: control target
= control target key end

     0   :  { %11 = vsyncpa [#allocation5], 0  ;;  %s421_s0 = inlined_call_operand.hbm [shape: f32[2], index: 0, kind: input, shape index: {}]   ;;  %s422_s1 = inlined_call_operand.hbm [shape: f32[8,128], index: 1, kind: input, shape index: {}]   ;;  %s423_s2 = inlined_call_operand.hbm [shape: f32[3,128], index: 2, kind: input, shape index: {}]   ;;  %s424_s3 = inlined_call_operand.hbm [shape: f32[128,128], index: 3, kind: input, shape index: {}]   ;;  %s425_s4 = inlined_call_operand.vmem [shape: f32[1,128], index: 4, kind: input, shape index: {}]   ;;  %s426_s5 = inlined_call_operand.vmem [shape: f32[1,128], index: 5, kind: input, shape index: {}]   ;;  %s427_s6 = inlined_call_operand.hbm [shape: f32[3,8], index: 6, kind: output, shape index: {}]  }
   0x1   :  { %12 = vsyncpa [#allocation3], 0 }
   0x2   :  { %13 = vsyncpa [#allocation8], 0  ;;  %s40_s23 = sshll.u32 %s423_s2, 4  ;;  %s41_s23 = int_to_ptr.hbm [resolvable:$true] %s40_s23 }
   0x3   :  { %14 = vsyncpa [#allocation4], 0  ;;  %s358_s24 = smov [#allocation7]   ;;  %s20_s28 = sshll.u32 %s421_s0, 4  ;;  %s21_s28 = int_to_ptr.hbm [resolvable:$true] %s20_s28 }
   0x4   :  { %s42_s25 = sshll.u32 %s358_s24, 4  ;;  %s359_s29 = smov [#allocation2]   ;;  %s43_s25 = int_to_ptr.vmem [resolvable:$true] %s42_s25 }
   0x5   :  { %45 = dma.hbm_to_vmem [thread:$0]  %s41_s23, 64, %s43_s25, [#allocation8]  }
   0x6   :  { %23 = dma.hbm_to_smem %s21_s28, 16, %s359_s29, [#allocation5]  }
   0x7   :  { %s29_s8 = sshll.u32 %s422_s1, 4  ;;  %s360_s9 = smov [#allocation6]   ;;  %s30_s8 = int_to_ptr.hbm [resolvable:$true] %s29_s8 }
   0x8   :  { %s31_s2 = sshll.u32 %s360_s9, 4  ;;  %s50_s12 = sshll.u32 %s424_s3, 4  ;;  %s32_s2 = int_to_ptr.vmem [resolvable:$true] %s31_s2  ;;  %s51_s12 = int_to_ptr.hbm [resolvable:$true] %s50_s12 }
   0x9   :  { %34 = dma.hbm_to_vmem [thread:$0]  %s30_s8, 128, %s32_s2, [#allocation3]  }
   0xa   :  { %s361_s13 = smov [#allocation9]   ;;  %s362_s14 = smov 128  }
   0xb   :  { %s52_s0 = sshll.u32 %s361_s13, 4  ;;  %s363_s15 = smov 8   ;;  %s53_s0 = int_to_ptr.vmem [resolvable:$true] %s52_s0 }
   0xc   :  { %58 = dma.hbm_to_vmem [thread:$0]  %s51_s12, 2048, %s53_s0, [#allocation8], %s362_s14, %s362_s14, %s363_s15  }
   0xd   :  { %350 = dma.done.wait [#allocation5], 16  }
   0xe   :  { %351 = vsyncadd [#allocation5], 4294967280 }
   0xf   :  { %352 = dma.done.wait [#allocation3], 128  }
  0x10   :  { %353 = vsyncadd [#allocation3], 4294967168 }
  0x11   :  { %354 = dma.done.wait [#allocation8], 2112  }
  0x12   :  { %355 = vsyncadd [#allocation8], 4294965184 }
  0x13   :  { %79 = sfence }
  0x14   :  { %v111_v0 = vld [vmem:[#allocation9 + $0x78] sm:$0xff]  ;;  %v110_v1 = vld [vmem:[#allocation9 + $0x70] sm:$0xff]  ;;  %v109_v2 = vld [vmem:[#allocation9 + $0x68] sm:$0xff]  ;;  %s200_s18 = sld [smem:[#allocation2 + $0x1]]  ;;  %v169_v42 = vlaneseq  ;;  %vm174_vm0 = vcmask 1041409   ;;  %s188_s22 = sshll.u32 %s427_s6, 4  ;;  %s189_s22 = int_to_ptr.hbm [resolvable:$true] %s188_s22 }
  0x15   :  { %116 = vmatpush.msra.mxu0 %v111_v0  ;;  %202 = vmatpush.msra.mxu2 %v111_v0  ;;  %v108_v3 = vld [vmem:[#allocation9 + $0x60] sm:$0xff]  ;;  %v107_v4 = vld [vmem:[#allocation9 + $0x58] sm:$0xff]  ;;  %v106_v5 = vld [vmem:[#allocation9 + $0x50] sm:$0xff]  ;;  %vm176_vm1 = vcmask 1042434   ;;  %vm179_vm2 = vcmask 59392  }
  0x16   :  { %201 = vmatpush.msra.mxu1 %v111_v0  ;;  %v105_v6 = vld [vmem:[#allocation9 + $0x48] sm:$0xff]  ;;  %v104_v7 = vld [vmem:[#allocation9 + $0x40] sm:$0xff]  ;;  %v103_v8 = vld [vmem:[#allocation9 + $0x38] sm:$0xff]  ;;  %v170_v48 = vand.u32 127, %v169_v42 }
  0x17   :  { %117 = vmatpush.msra.mxu0 %v110_v1  ;;  %204 = vmatpush.msra.mxu2 %v110_v1  ;;  %v102_v9 = vld [vmem:[#allocation9 + $0x30] sm:$0xff]  ;;  %v83_v10 = vld [vmem:[#allocation7] sm:$0x7]  ;;  %v101_v11 = vld [vmem:[#allocation9 + $0x28] sm:$0xff] }
  0x18   :  { %203 = vmatpush.msra.mxu1 %v110_v1  ;;  %v100_v12 = vld [vmem:[#allocation9 + $0x20] sm:$0xff]  ;;  %v86_v13 = vrot.slane %v83_v10, 2  ;;  %v99_v14 = vld [vmem:[#allocation9 + $0x18] sm:$0xff]  ;;  %v85_v15 = vrot.slane %v83_v10, 1  ;;  %v98_v16 = vld [vmem:[#allocation9 + $0x10] sm:$0xff]  ;;  %v87_v17 = vperm.slane %v83_v10, 0 }
  0x19   :  { %118 = vmatpush.msra.mxu0 %v109_v2  ;;  %206 = vmatpush.msra.mxu2 %v109_v2  ;;  %v82_v19 = vld [vmem:[#allocation6] sm:$0xff]  ;;  %v97_v20 = vld [vmem:[#allocation9 + $0x8] sm:$0xff]  ;;  %v96_v22 = vld [vmem:[#allocation9] sm:$0xff] }
  0x1a   :  { %205 = vmatpush.msra.mxu1 %v109_v2  ;;  %v89_v18 = vperm.slane %v86_v13, 0  ;;  %v88_v21 = vperm.slane %v85_v15, 0  ;;  %v93_v23 = vmul.f32 %v87_v17, %v82_v19  ;;  %v240_v26 = vld [vmem:[%s425_s4] ss:$0 sm:$0xff]  ;;  %s80_s4 = sld [smem:[#allocation2]]  ;;  %v162_v44 = vstv %s200_s18 }
  0x1b   :  { %119 = vmatpush.msra.mxu0 %v108_v3  ;;  %208 = vmatpush.msra.mxu2 %v108_v3  ;;  %v241_v29 = vld [vmem:[%s426_s5] ss:$0 sm:$0xff]  ;;  %s364_s5 = smov [#allocation10]  }
  0x1c   :  { %207 = vmatpush.msra.mxu1 %v108_v3  ;;  %v95_v24 = vmul.f32 %v89_v18, %v82_v19  ;;  %v94_v25 = vmul.f32 %v88_v21, %v82_v19  ;;  %s186_s19 = sshll.u32 %s364_s5, 4  ;;  %s187_s19 = int_to_ptr.vmem [resolvable:$true] %s186_s19 }
  0x1d   :  { %120 = vmatpush.msra.mxu0 %v107_v4  ;;  %210 = vmatpush.msra.mxu2 %v107_v4 }
  0x1e   :  { %209 = vmatpush.msra.mxu1 %v107_v4 }
  0x1f   :  { %121 = vmatpush.msra.mxu0 %v106_v5  ;;  %212 = vmatpush.msra.mxu2 %v106_v5 }
  0x20   :  { %211 = vmatpush.msra.mxu1 %v106_v5  ;;  %v158_v41 = vstv %s80_s4 }
  0x21   :  { %122 = vmatpush.msra.mxu0 %v105_v6  ;;  %214 = vmatpush.msra.mxu2 %v105_v6 }
  0x22   :  { %213 = vmatpush.msra.mxu1 %v105_v6 }
  0x23   :  { %123 = vmatpush.msra.mxu0 %v104_v7  ;;  %216 = vmatpush.msra.mxu2 %v104_v7 }
  0x24   :  { %215 = vmatpush.msra.mxu1 %v104_v7 }
  0x25   :  { %124 = vmatpush.msra.mxu0 %v103_v8  ;;  %218 = vmatpush.msra.mxu2 %v103_v8 }
  0x26   :  { %217 = vmatpush.msra.mxu1 %v103_v8 }
  0x27   :  { %125 = vmatpush.msra.mxu0 %v102_v9  ;;  %220 = vmatpush.msra.mxu2 %v102_v9 }
  0x28   :  { %219 = vmatpush.msra.mxu1 %v102_v9 }
  0x29   :  { %126 = vmatpush.msra.mxu0 %v101_v11  ;;  %222 = vmatpush.msra.mxu2 %v101_v11 }
  0x2a   :  { %221 = vmatpush.msra.mxu1 %v101_v11 }
  0x2b   :  { %127 = vmatpush.msra.mxu0 %v100_v12  ;;  %224 = vmatpush.msra.mxu2 %v100_v12 }
  0x2c   :  { %223 = vmatpush.msra.mxu1 %v100_v12 }
  0x2d   :  { %128 = vmatpush.msra.mxu0 %v99_v14  ;;  %226 = vmatpush.msra.mxu2 %v99_v14 }
  0x2e   :  { %225 = vmatpush.msra.mxu1 %v99_v14 }
  0x2f   :  { %129 = vmatpush.msra.mxu0 %v98_v16  ;;  %228 = vmatpush.msra.mxu2 %v98_v16 }
  0x30   :  { %227 = vmatpush.msra.mxu1 %v98_v16 }
  0x31   :  { %130 = vmatpush.msra.mxu0 %v97_v20  ;;  %230 = vmatpush.msra.mxu2 %v97_v20 }
  0x32   :  { %229 = vmatpush.msra.mxu1 %v97_v20 }
  0x33   :  { %131 = vmatpush.msra.mxu0 %v96_v22  ;;  %232 = vmatpush.msra.mxu2 %v96_v22 }
  0x34   :  { %132 = vmatmul.f32.vlgmr.msra.gmra.mxu0 %v93_v23  ;;  %138 = vmatmul.f32.vlgmr.msra.gmra.mxu2 %v95_v24 }
  0x35   :  { %231 = vmatpush.msra.mxu1 %v96_v22 }
  0x36   :  { %135 = vmatmul.f32.vlgmr.msra.gmra.mxu1 %v94_v25 }
  0xb1   :  { %v133_v27 = vpop.f32.mrf.mxu0 }
  0xb2   :  { %v134_v28 = vadd.f32 %v240_v26, %v133_v27 }
  0xb3   :  { %v136_v30 = vpop.f32.mrf.mxu1 }
  0xb4   :  { %v142_v31 = vmax.f32 %v134_v28, 0.0  ;;  %v137_v32 = vadd.f32 %v240_v26, %v136_v30 }
  0xb6   :  { %v149_v33 = vmul.f32 %v241_v29, %v142_v31  ;;  %v143_v35 = vmax.f32 %v137_v32, 0.0 }
  0xb7   :  { %v139_v34 = vpop.f32.mrf.mxu2 }
  0xb8   :  { %152 = vadd.xlane.f32.xlu0 %v149_v33  ;;  %v140_v36 = vadd.f32 %v240_v26, %v139_v34  ;;  %v150_v38 = vmul.f32 %v241_v29, %v143_v35 }
  0xba   :  { %v144_v37 = vmax.f32 %v140_v36, 0.0 }
  0xbc   :  { %v151_v39 = vmul.f32 %v241_v29, %v144_v37 }
  0xbe   :  { %156 = vadd.xlane.f32.xlu1 %v151_v39 }
  0xc0   :  { %154 = vadd.xlane.f32.xlu0 %v150_v38 }
 0x12b   :  { %v153_v40 = vpop.xlane.xlu0 %152 }
 0x12c   :  { %v159_v43 = vadd.f32 %v158_v41, %v153_v40 }
 0x12e   :  { %v163_v49 = vmul.f32 %v162_v44, %v159_v43 }
 0x130   :  { %v171_v54 = vperm.slane %v163_v49, %v170_v48 }
 0x131   :  { %v157_v45 = vpop.xlane.xlu1 %156 }
 0x132   :  { %v161_v46 = vadd.f32 %v158_v41, %v157_v45 }
 0x133   :  { %v155_v47 = vpop.xlane.xlu0 %154 }
 0x134   :  { %v160_v50 = vadd.f32 %v158_v41, %v155_v47  ;;  %v165_v51 = vmul.f32 %v162_v44, %v161_v46 }
 0x136   :  { %v164_v52 = vmul.f32 %v162_v44, %v160_v50  ;;  %v173_v53 = vperm.slane %v165_v51, %v170_v48 }
 0x138   :  { %v172_v55 = vperm.slane %v164_v52, %v170_v48 }
 0x13a   :  { %v175_v56 = vsel %vm174_vm0, %v172_v55, %v171_v54 }
 0x13b   :  { %v177_v57 = vsel %vm176_vm1, %v173_v53, %v175_v56 }
 0x13c   :  { %180 = vst.msk [vmem:[#allocation10] sm:$0x7] %vm179_vm2, %v177_v57 }
 0x13d   :  { %191 = dma.vmem_to_hbm [thread:$0]  %s187_s19, 64, %s189_s22, [#allocation4]  }
 0x13e   :  { %356 = dma.done.wait [#allocation4], 64  }
 0x13f   :  { %357 = vsyncadd [#allocation4], 4294967232 }
 0x140   :  { %196 = vsyncpa [#allocation3], 1 }
 0x141   :  { %197 = vsyncpa [#allocation8], 1 }
 0x142   :  { %198 = vsyncpa [#allocation4], 1 }
 0x143   :  { %199 = vsyncpa [#allocation5], 1 }

</bundles_post_ra>
